<compile_context>
chip_gen: v5e
topology: v5e:2x2
jax: 0.10.0
libtpu: 0.0.40
codegen_flags: <defaults>
</compile_context>

<pallas_src>
import functools
import math

import jax
import jax.numpy as jnp
from jax.experimental import pallas as pl
from jax.experimental.pallas import tpu as pltpu


def _norm_kernel(x_ref, alpha_ref, bias_ref, o_ref, *, eps):
    # x_ref: (TR, D) tile of rows; alpha_ref/bias_ref: (1, D).
    x = x_ref[...].astype(jnp.float32)
    d = x.shape[-1]

    # Two-pass statistics on the VMEM-resident tile: mean first, then the
    # centered sum of squares. This matches torch's numerically-stable std
    # and avoids the E[x^2]-E[x]^2 cancellation of the single-pass form.
    mean = jnp.sum(x, axis=-1, keepdims=True) * jnp.float32(1.0 / d)
    centered = x - mean
    # Unbiased (ddof=1) variance, matching torch.Tensor.std().
    # NOTE: d == 1 gives NaN (0/0), exactly like torch.std(unbiased=True).
    inv_dm1 = jnp.float32(1.0 / (d - 1)) if d > 1 else jnp.float32(jnp.nan)
    var = jnp.sum(centered * centered, axis=-1, keepdims=True) * inv_dm1
    std = jnp.sqrt(var)

    # Exact per-row reciprocal (a (TR, 1) column), then a broadcast multiply,
    # instead of a full-width (TR, D) divide. approx=False keeps full f32
    # accuracy; the op is per-row so its cost is negligible either way.
    inv = pl.reciprocal(std + jnp.float32(eps), approx=False)

    alpha = alpha_ref[...].astype(jnp.float32)
    bias = bias_ref[...].astype(jnp.float32)
    y = centered * inv * alpha + bias
    o_ref[...] = y.astype(o_ref.dtype)


def _vmem_capacity_bytes():
    """Physical per-core VMEM capacity; conservative (v7x) fallback."""
    try:
        info = pltpu.get_tpu_info()
        cap = getattr(info, "vmem_capacity_bytes", None)
        if cap:
            return int(cap)
    except Exception:
        pass
    return 64 * 1024 * 1024  # v7x per-TensorCore VMEM (smallest of the gens)


def _choose_row_tile(rows, d, itemsize, vmem_capacity):
    """Largest row tile that amortizes per-step overhead, stays VMEM-safe,
    and keeps the grid long enough to feed multiple TensorCores."""
    itemsize = max(int(itemsize), 1)
    # Sub-32-bit dtypes pack along sublanes: keep tiles a multiple of the
    # packed sublane count (8 for f32, 16 for bf16, ...).
    sublane = max(8, 32 // itemsize)

    # VMEM budget with headroom for compiler-internal scratch.
    budget = (vmem_capacity * 3) // 4
    # Per-row VMEM estimate: double-buffered in+out BlockSpec tiles in the
    # *native* dtype, plus ~3 tile-sized f32 compute temporaries.
    per_row_bytes = d * (4 * itemsize + 3 * 4)

    min_rows = min(rows, sublane)
    if min_rows * per_row_bytes > budget:
        # TODO(synk): column-tiled two-pass fallback (accumulate s1/s2 over
        # D tiles in VMEM scratch, normalize in a second pass) for very wide D.
        raise ValueError(
            f"Norm kernel: minimum row tile ({min_rows} x {d}) exceeds the "
            f"VMEM budget ({budget} bytes); feature dim too wide for the "
            f"single-pass row-tiled kernel.")

    if rows <= sublane:
        # Block equals the full row extent -> always a legal block shape.
        return rows

    # Target ~8 MiB of *native-dtype* input bytes per step (itemsize-aware,
    # so bf16 moves the same HBM bytes per step as f32), which makes the
    # ~0.35 us per-grid-step overhead negligible even at v7x HBM bandwidth.
    t_target = max(sublane, (8 * 1024 * 1024) // (d * itemsize))
    t_budget = max(sublane, budget // per_row_bytes)
    t = min(t_target, t_budget)

    # Keep the grid >= ~8 steps when there is enough work so that
    # dimension_semantics=("parallel",) can shard across v7x's 2 TensorCores
    # and input/output DMAs overlap across steps.
    if rows >= 8 * sublane:
        t = min(t, rows // 8)

    t = max(sublane, (t // sublane) * sublane)
    rows_up = ((rows + sublane - 1) // sublane) * sublane
    return min(t, rows_up)


def norm(x, alpha, bias, eps=1e-6, *, row_tile=None):
    """Norm over the last axis of x (any leading dims), PyTorch semantics."""
    orig_shape = x.shape
    d = orig_shape[-1]
    rows = int(math.prod(orig_shape[:-1]))  # empty product -> 1
    x2 = x.reshape(rows, d)
    alpha2 = alpha.reshape(1, d)
    bias2 = bias.reshape(1, d)

    itemsize = jnp.dtype(x.dtype).itemsize
    vmem_capacity = _vmem_capacity_bytes()
    if row_tile is None:
        row_tile = _choose_row_tile(rows, d, itemsize, vmem_capacity)

    # Scoped-VMEM ceiling with real headroom: capacity - 8 MiB (=> ~56 MiB on
    # v7x's 64 MiB VMEM), capped at 96 MiB on the 128 MiB parts (v5e/v6e).
    vmem_limit = max(32 * 1024 * 1024,
                     min(vmem_capacity - 8 * 1024 * 1024, 96 * 1024 * 1024))

    # No jnp.pad / output slice: use a ceil-div grid and let Pallas handle the
    # ragged last block. Rows are independent, so any garbage values read in
    # the out-of-range rows of the last input block stay row-local (worst
    # case NaN/Inf in rows that are never written back), and the out-of-range
    # output rows are dropped on writeback.
    grid = (pl.cdiv(rows, row_tile),)

    # TODO(synk): for D < 128 a lane-dense repack (folding k = 128//D rows
    # into one 128-lane row with a segmented reduction) would avoid masked
    # vst.msk partial stores; not implemented here.
    out = pl.pallas_call(
        functools.partial(_norm_kernel, eps=eps),
        out_shape=jax.ShapeDtypeStruct((rows, d), x.dtype),
        grid_spec=pltpu.PrefetchScalarGridSpec(
            num_scalar_prefetch=0,
            grid=grid,
            in_specs=[
                pl.BlockSpec((row_tile, d), lambda i: (i, 0)),
                pl.BlockSpec((1, d), lambda i: (0, 0)),
                pl.BlockSpec((1, d), lambda i: (0, 0)),
            ],
            out_specs=pl.BlockSpec((row_tile, d), lambda i: (i, 0)),
        ),
        compiler_params=pltpu.CompilerParams(
            dimension_semantics=("parallel",),
            vmem_limit_bytes=int(vmem_limit),
        ),
    )(x2, alpha2, bias2)

    return out.reshape(orig_shape)


def norm_ref(x, alpha, bias, eps=1e-6):
    """Pure-JAX reference matching the PyTorch forward exactly."""
    x32 = x.astype(jnp.float32)
    mean = jnp.mean(x32, axis=-1, keepdims=True)
    std = jnp.std(x32, axis=-1, keepdims=True, ddof=1)  # unbiased, like torch
    return (alpha * (x32 - mean) / (std + eps) + bias).astype(x.dtype)


if __name__ == "__main__":
    key = jax.random.PRNGKey(0)
    batch, seq, hidden = 2, 8, 32

    x = jax.random.normal(key, (batch, seq, hidden), dtype=jnp.float32)
    # Deterministic parameter init, matching nn.Parameter(ones / zeros).
    alpha = jnp.ones((hidden,), dtype=jnp.float32)
    bias = jnp.zeros((hidden,), dtype=jnp.float32)

    out = jax.block_until_ready(norm(x, alpha, bias))
    ref = norm_ref(x, alpha, bias)
    assert out.shape == x.shape and out.dtype == x.dtype
    assert jnp.allclose(out, ref, atol=1e-5, rtol=1e-5), "mismatch vs reference"

    # Non-centered data (|mean| >> std): exercises the two-pass variance path
    # that the previous single-pass formulation could get badly wrong.
    x_off = x * 0.01 + 100.0
    out_off = jax.block_until_ready(norm(x_off, alpha, bias))
    ref_off = norm_ref(x_off, alpha, bias)
    assert jnp.allclose(out_off, ref_off, atol=1e-4, rtol=1e-4), \
        "non-centered mismatch"

    # Exercise the ragged-last-block path (rows not a multiple of row_tile).
    k2 = jax.random.PRNGKey(1)
    x2 = jax.random.normal(k2, (2, 5, hidden), dtype=jnp.float32)
    out2 = jax.block_until_ready(norm(x2, alpha, bias, row_tile=8))
    ref2 = norm_ref(x2, alpha, bias)
    assert jnp.allclose(out2, ref2, atol=1e-5, rtol=1e-5), "ragged-block mismatch"

    print("KERNEL_OK")
</pallas_src>

<mosaic_0001>
module attributes {stable_mosaic.version = 11 : i64} {
  func.func @_norm_kernel(%arg0: i32, %arg1: memref<16x32xf32, #tpu.memory_space<vmem>>, %arg2: memref<1x32xf32, #tpu.memory_space<vmem>>, %arg3: memref<1x32xf32, #tpu.memory_space<vmem>>, %arg4: memref<16x32xf32, #tpu.memory_space<vmem>>) attributes {dimension_semantics = [#tpu.dimension_semantics<parallel>], iteration_bounds = array<i64: 1>, scalar_prefetch = 0 : i64, scratch_operands = 0 : i64, tpu.core_type = #tpu.core_type<tc>, window_params = [{transform_indices = @transform_0, window_bounds = array<i64: 16, 32>}, {pipeline_mode = #tpu.pipeline_mode<synchronous>, transform_indices = @transform_1, window_bounds = array<i64: 1, 32>}, {pipeline_mode = #tpu.pipeline_mode<synchronous>, transform_indices = @transform_2, window_bounds = array<i64: 1, 32>}, {transform_indices = @transform_3, window_bounds = array<i64: 16, 32>}]} {
    %c0 = arith.constant 0 : index
    %c0_0 = arith.constant 0 : index
    %0 = vector.load %arg1[%c0, %c0_0] : memref<16x32xf32, #tpu.memory_space<vmem>>, vector<16x32xf32>
    %cst = arith.constant dense<0.000000e+00> : vector<16xf32>
    %1 = vector.multi_reduction <add>, %0, %cst [1] : vector<16x32xf32> to vector<16xf32>
    %2 = vector.shape_cast %1 : vector<16xf32> to vector<16x1xf32>
    %cst_1 = arith.constant 3.125000e-02 : f32
    %3 = vector.broadcast %cst_1 : f32 to vector<16x1xf32>
    %4 = arith.mulf %2, %3 : vector<16x1xf32>
    %5 = vector.broadcast %4 : vector<16x1xf32> to vector<16x32xf32>
    %6 = arith.subf %0, %5 : vector<16x32xf32>
    %7 = arith.mulf %6, %6 : vector<16x32xf32>
    %cst_2 = arith.constant dense<0.000000e+00> : vector<16xf32>
    %8 = vector.multi_reduction <add>, %7, %cst_2 [1] : vector<16x32xf32> to vector<16xf32>
    %9 = vector.shape_cast %8 : vector<16xf32> to vector<16x1xf32>
    %cst_3 = arith.constant 0.0322580636 : f32
    %10 = vector.broadcast %cst_3 : f32 to vector<16x1xf32>
    %11 = arith.mulf %9, %10 : vector<16x1xf32>
    %12 = math.sqrt %11 : vector<16x1xf32>
    %cst_4 = arith.constant 9.99999997E-7 : f32
    %13 = vector.broadcast %cst_4 : f32 to vector<16x1xf32>
    %14 = arith.addf %12, %13 : vector<16x1xf32>
    %15 = tpu.reciprocal %14 : vector<16x1xf32> -> vector<16x1xf32>
    %c0_5 = arith.constant 0 : index
    %c0_6 = arith.constant 0 : index
    %16 = vector.load %arg2[%c0_5, %c0_6] : memref<1x32xf32, #tpu.memory_space<vmem>>, vector<1x32xf32>
    %c0_7 = arith.constant 0 : index
    %c0_8 = arith.constant 0 : index
    %17 = vector.load %arg3[%c0_7, %c0_8] : memref<1x32xf32, #tpu.memory_space<vmem>>, vector<1x32xf32>
    %18 = vector.broadcast %15 : vector<16x1xf32> to vector<16x32xf32>
    %19 = arith.mulf %6, %18 : vector<16x32xf32>
    %20 = vector.broadcast %16 : vector<1x32xf32> to vector<16x32xf32>
    %21 = arith.mulf %19, %20 : vector<16x32xf32>
    %22 = vector.broadcast %17 : vector<1x32xf32> to vector<16x32xf32>
    %23 = arith.addf %21, %22 : vector<16x32xf32>
    %c0_9 = arith.constant 0 : index
    %c0_10 = arith.constant 0 : index
    %24 = vector.load %arg4[%c0_9, %c0_10] : memref<16x32xf32, #tpu.memory_space<vmem>>, vector<16x32xf32>
    tpu.vector_store %arg4[%c0_9, %c0_10], %23 {strides = array<i32>} : memref<16x32xf32, #tpu.memory_space<vmem>>, vector<16x32xf32>,
    return
  }
  func.func @transform_0(%arg0: i32) -> (i32, i32) {
    %c0_i32 = arith.constant 0 : i32
    %c0_i32_0 = arith.constant 0 : i32
    return %arg0, %c0_i32 : i32, i32
  }
  func.func @transform_1(%arg0: i32) -> (i32, i32) {
    %c0_i32 = arith.constant 0 : i32
    %c0_i32_0 = arith.constant 0 : i32
    %c0_i32_1 = arith.constant 0 : i32
    return %c0_i32, %c0_i32_0 : i32, i32
  }
  func.func @transform_2(%arg0: i32) -> (i32, i32) {
    %c0_i32 = arith.constant 0 : i32
    %c0_i32_0 = arith.constant 0 : i32
    %c0_i32_1 = arith.constant 0 : i32
    return %c0_i32, %c0_i32_0 : i32, i32
  }
  func.func @transform_3(%arg0: i32) -> (i32, i32) {
    %c0_i32 = arith.constant 0 : i32
    %c0_i32_0 = arith.constant 0 : i32
    return %arg0, %c0_i32 : i32, i32
  }
}

</mosaic_0001>

<bundles_post_ra>
// kernel: tpu_custom_call.1
= control target key start
LH: loop header
LB: loop body
LE: loop exit
PB: predicated region body
PF: predicated region fallthrough
CT: control target
= control target key end

     0   :  { %8 = vsyncpa [#allocation3], 0  ;;  %s305_s0 = inlined_call_operand.hbm [shape: f32[16,32], index: 0, kind: input, shape index: {}]   ;;  %s306_s1 = inlined_call_operand.hbm [shape: f32[1,32], index: 1, kind: input, shape index: {}]   ;;  %s307_s2 = inlined_call_operand.vmem [shape: f32[1,32], index: 2, kind: input, shape index: {}]   ;;  %s308_s3 = inlined_call_operand.hbm [shape: f32[16,32], index: 3, kind: output, shape index: {}]  }
   0x1   :  { %9 = vsyncpa [#allocation6], 0 }
   0x2   :  { %10 = vsyncpa [#allocation4], 0  ;;  %s15_s14 = sshll.u32 %s305_s0, 4  ;;  %s251_s15 = smov [#allocation2]   ;;  %s16_s14 = int_to_ptr.hbm [resolvable:$true] %s15_s14 }
   0x3   :  { %s17_s16 = sshll.u32 %s251_s15, 4  ;;  %s29_s19 = sshll.u32 %s306_s1, 4  ;;  %s18_s16 = int_to_ptr.vmem [resolvable:$true] %s17_s16  ;;  %s30_s19 = int_to_ptr.hbm [resolvable:$true] %s29_s19 }
   0x4   :  { %s252_s20 = smov 128   ;;  %s253_s21 = smov 8  }
   0x5   :  { %23 = dma.hbm_to_vmem [thread:$0]  %s16_s14, 256, %s18_s16, [#allocation3], %s252_s20, %s252_s20, %s253_s21  }
   0x6   :  { %s254_s22 = smov [#allocation5]  }
   0x7   :  { %s31_s23 = sshll.u32 %s254_s22, 4  ;;  %s32_s23 = int_to_ptr.vmem [resolvable:$true] %s31_s23 }
   0x8   :  { %34 = dma.hbm_to_vmem [thread:$0]  %s30_s19, 16, %s32_s23, [#allocation6]  }
   0x9   :  { %245 = dma.done.wait [#allocation3], 256  }
   0xa   :  { %246 = vsyncadd [#allocation3], 4294967040 }
   0xb   :  { %247 = dma.done.wait [#allocation6], 16  }
   0xc   :  { %248 = vsyncadd [#allocation6], 4294967280  ;;  %vm47_vm0 = vcmask 261120   ;;  %v45_v0 = vld [vmem:[#allocation2] sm:$0xff]  ;;  %v46_v2 = vld [vmem:[#allocation2 + $0x8] sm:$0xff]  ;;  %s255_s24 = smov [#allocation7]  }
   0xd   :  { %v48_v1 = vsel %vm47_vm0, %v45_v0, 0.0  ;;  %v51_v3 = vsel %vm47_vm0, %v46_v2, 0.0  ;;  %v163_v51 = vld [vmem:[#allocation5] ss:$0 sm:$0xff]  ;;  %v164_v55 = vld [vmem:[%s307_s2] ss:$0 sm:$0xff] }
   0xe   :  { %49 = vadd.xlane.f32.xlu0 %v48_v1  ;;  %s142_s25 = sshll.u32 %s255_s24, 4  ;;  %s144_s27 = sshll.u32 %s308_s3, 4  ;;  %s143_s25 = int_to_ptr.vmem [resolvable:$true] %s142_s25  ;;  %s145_s27 = int_to_ptr.hbm [resolvable:$true] %s144_s27 }
  0x16   :  { %52 = vadd.xlane.f32.xlu0 %v51_v3 }
  0x81   :  { %v50_v4 = vpop.xlane.xlu0 %49 }
  0x82   :  { %v54_v5 = vmul.f32 0.03125, %v50_v4 }
  0x84   :  { %v56_v6 = vsub.f32 %v45_v0, %v54_v5 }
  0x86   :  { %v58_v7 = vmul.f32 %v56_v6, %v56_v6 }
  0x88   :  { %v60_v8 = vsel %vm47_vm0, %v58_v7, 0.0 }
  0x89   :  { %61 = vadd.xlane.f32.xlu1 %v60_v8  ;;  %v53_v9 = vpop.xlane.xlu0 %52 }
  0x8a   :  { %v55_v10 = vmul.f32 0.03125, %v53_v9 }
  0x8c   :  { %v288_v11 = vsub.f32 %v46_v2, %v55_v10 }
  0x8e   :  { %v59_v12 = vmul.f32 %v288_v11, %v288_v11 }
  0x90   :  { %v63_v13 = vsel %vm47_vm0, %v59_v12, 0.0 }
  0x91   :  { %64 = vadd.xlane.f32.xlu1 %v63_v13 }
  0xfc   :  { %v62_v14 = vpop.xlane.xlu1 %61 }
  0xfd   :  { %v66_v15 = vmul.f32 0.032258064, %v62_v14 }
  0xff   :  { %165 = vrsqrt.f32 %v66_v15  ;;  %vm75_vm1 = vcmp.eq.f32.partialorder %v66_v15, inf  ;;  %v78_v28 = vand.u32 2147483648, %v66_v15  ;;  %vm77_vm2 = vcmp.eq.f32.partialorder %v66_v15, 0.0 }
 0x104   :  { %v65_v16 = vpop.xlane.xlu1 %64 }
 0x105   :  { %v166_v17 = vpop.eup %165  ;;  %v67_v18 = vmul.f32 0.032258064, %v65_v16 }
 0x106   :  { %v69_v19 = vmul.f32 %v166_v17, %v66_v15 }
 0x107   :  { %167 = vrsqrt.f32 %v67_v18  ;;  %vm87_vm3 = vcmp.eq.f32.partialorder %v67_v18, inf  ;;  %v90_v36 = vand.u32 2147483648, %v67_v18  ;;  %vm89_vm4 = vcmp.eq.f32.partialorder %v67_v18, 0.0 }
 0x108   :  { %v70_v20 = vmul.f32 %v166_v17, %v69_v19 }
 0x10a   :  { %v71_v21 = vmul.f32 0.5, %v70_v20 }
 0x10c   :  { %v72_v22 = vsub.f32 1.5, %v71_v21 }
 0x10d   :  { %v168_v23 = vpop.eup %167 }
 0x10e   :  { %v73_v24 = vmul.f32 %v166_v17, %v72_v22  ;;  %v81_v25 = vmul.f32 %v168_v23, %v67_v18 }
 0x110   :  { %v74_v26 = vmul.f32 %v73_v24, %v66_v15  ;;  %v82_v27 = vmul.f32 %v168_v23, %v81_v25 }
 0x112   :  { %v76_v29 = vsel %vm75_vm1, %v66_v15, %v74_v26  ;;  %v83_v30 = vmul.f32 0.5, %v82_v27 }
 0x113   :  { %v79_v31 = vsel %vm77_vm2, %v78_v28, %v76_v29 }
 0x114   :  { %v92_v32 = vadd.f32 1e-06, %v79_v31  ;;  %v84_v33 = vsub.f32 1.5, %v83_v30 }
 0x116   :  { %169 = vrcp.f32 %v92_v32  ;;  %v85_v34 = vmul.f32 %v168_v23, %v84_v33  ;;  %v105_v43 = vand.u32 2147483648, %v92_v32  ;;  %v103_v45 = vand.u32 2147483647, %v92_v32 }
 0x117   :  { %vm99_vm6 = vweird.f32 %v92_v32 }
 0x118   :  { %v86_v35 = vmul.f32 %v85_v34, %v67_v18  ;;  %v106_v48 = vor.u32 1.1754944e-38, %v105_v43  ;;  %vm104_vm8 = vcmp.eq.f32.partialorder %v103_v45, 8.507059e+37 }
 0x11a   :  { %v88_v37 = vsel %vm87_vm3, %v67_v18, %v86_v35 }
 0x11b   :  { %v91_v38 = vsel %vm89_vm4, %v90_v36, %v88_v37 }
 0x11c   :  { %v170_v39 = vpop.eup %169  ;;  %v93_v40 = vadd.f32 1e-06, %v91_v38 }
 0x11d   :  { %v95_v41 = vmul.f32 %v170_v39, %v92_v32  ;;  %vm100_vm5 = vweird.f32 %v170_v39 }
 0x11e   :  { %171 = vrcp.f32 %v93_v40  ;;  %vm101_vm7 = vmor %vm99_vm6, %vm100_vm5  ;;  %v119_v56 = vand.u32 2147483648, %v93_v40  ;;  %v117_v58 = vand.u32 2147483647, %v93_v40  ;;  %vm113_vm10 = vweird.f32 %v93_v40 }
 0x11f   :  { %v96_v42 = vsub.f32 1.0, %v95_v41 }
 0x120   :  { %v120_v62 = vor.u32 1.1754944e-38, %v119_v56  ;;  %vm118_vm12 = vcmp.eq.f32.partialorder %v117_v58, 8.507059e+37 }
 0x121   :  { %v97_v44 = vmul.f32 %v170_v39, %v96_v42 }
 0x123   :  { %v98_v46 = vadd.f32 %v170_v39, %v97_v44 }
 0x124   :  { %v172_v47 = vpop.eup %171 }
 0x125   :  { %v102_v49 = vsel %vm101_vm7, %v170_v39, %v98_v46  ;;  %v109_v50 = vmul.f32 %v172_v47, %v93_v40  ;;  %vm114_vm9 = vweird.f32 %v172_v47 }
 0x126   :  { %v107_v52 = vsel %vm104_vm8, %v106_v48, %v102_v49  ;;  %vm115_vm11 = vmor %vm113_vm10, %vm114_vm9 }
 0x127   :  { %v110_v53 = vsub.f32 1.0, %v109_v50  ;;  %v124_v54 = vmul.f32 %v107_v52, %v56_v6 }
 0x129   :  { %v111_v57 = vmul.f32 %v172_v47, %v110_v53  ;;  %v129_v59 = vmul.f32 %v163_v51, %v124_v54 }
 0x12b   :  { %v112_v60 = vadd.f32 %v172_v47, %v111_v57  ;;  %v134_v61 = vadd.f32 %v164_v55, %v129_v59 }
 0x12d   :  { %v116_v63 = vsel %vm115_vm11, %v172_v47, %v112_v60  ;;  %136 = vst.msk [vmem:[#allocation7] sm:$0xff] %vm47_vm0, %v134_v61 }
 0x12e   :  { %v121_v0 = vsel %vm118_vm12, %v120_v62, %v116_v63 }
 0x12f   :  { %v125_v1 = vmul.f32 %v121_v0, %v288_v11 }
 0x131   :  { %v130_v2 = vmul.f32 %v163_v51, %v125_v1 }
 0x133   :  { %v135_v3 = vadd.f32 %v164_v55, %v130_v2 }
 0x135   :  { %137 = vst.msk [vmem:[#allocation7 + $0x8] sm:$0xff] %vm47_vm0, %v135_v3 }
 0x136   :  { %150 = dma.vmem_to_hbm [thread:$0]  %s143_s25, 256, %s145_s27, [#allocation4], %s252_s20, %s252_s20, %s253_s21  }
 0x137   :  { %249 = dma.done.wait [#allocation4], 256  }
 0x138   :  { %250 = vsyncadd [#allocation4], 4294967040 }
 0x139   :  { %155 = vsyncpa [#allocation3], 1 }
 0x13a   :  { %156 = vsyncpa [#allocation6], 1 }
 0x13b   :  { %157 = vsyncpa [#allocation4], 1 }

</bundles_post_ra>
